<compile_context>
chip_gen: v7x
topology: tpu7x:2x2x1
jax: 0.10.0
libtpu: 0.0.40
codegen_flags: <defaults>
</compile_context>

<pallas_src>
import math

import jax
import jax.numpy as jnp
import numpy as np
from jax import lax
from jax.experimental import pallas as pl
from jax.experimental.pallas import tpu as pltpu

PAD_IDX = 0


# ----------------------------------------------------------------------------
# Fused decoder kernel: grid over GRU layers, recurrence unrolled inside.
# ----------------------------------------------------------------------------
def decoder_kernel(x_ref, wih_ref, whh_ref, bcomb_ref, bhhn_ref, h0_ref,
                   wout_ref, bout_ref, scores_ref, hfin_ref,
                   x_vmem, gi_vmem):
    l = pl.program_id(0)
    last = pl.num_programs(0) - 1

    H = whh_ref.shape[1]          # hidden size
    B = h0_ref.shape[1]           # batch
    SB = x_vmem.shape[0]          # S * B rows (time-major, flattened)
    S = SB // B

    # Layer 0: load the embedded input into the resident activation slab.
    @pl.when(l == 0)
    def _():
        x_vmem[...] = x_ref[...].astype(jnp.float32)

    wih = wih_ref[0]              # (H, 3H), pre-transposed
    whh = whh_ref[0]              # (H, 3H), pre-transposed
    bhh_n = jnp.broadcast_to(bhhn_ref[0], (B, H))   # hoisted broadcast

    # Hoisted input projection for the whole sequence: one big MXU matmul
    # (M = S*B) instead of S tiny ones inside the serial loop.
    gi_vmem[...] = (jnp.dot(x_vmem[...], wih,
                            preferred_element_type=jnp.float32)
                    + bcomb_ref[0])

    # Serial recurrence: only gh = h @ W_hh^T per step (statically unrolled;
    # decoder sequences are short, typically S == 1).
    h = h0_ref[0].astype(jnp.float32)               # (B, H)
    for t in range(S):
        rows = pl.ds(t * B, B)
        gh = jnp.dot(h, whh, preferred_element_type=jnp.float32)   # (B, 3H)
        gi_t = gi_vmem[rows, :]                                     # (B, 3H)
        r = jax.nn.sigmoid(gi_t[:, 0:H] + gh[:, 0:H])
        z = jax.nn.sigmoid(gi_t[:, H:2 * H] + gh[:, H:2 * H])
        n = jnp.tanh(gi_t[:, 2 * H:3 * H] + r * (gh[:, 2 * H:3 * H] + bhh_n))
        h = (1.0 - z) * n + z * h
        x_vmem[rows, :] = h        # becomes next layer's input

    # Final hidden of this layer, written once per layer.
    hfin_ref[0] = h.astype(hfin_ref.dtype)

    # Last layer: fused output projection + log-softmax (no HBM roundtrip of
    # the GRU output sequence).
    @pl.when(l == last)
    def _():
        logits = (jnp.dot(x_vmem[...], wout_ref[...],
                          preferred_element_type=jnp.float32)
                  + bout_ref[...])                                  # (S*B, V)
        m = jnp.max(logits, axis=-1, keepdims=True)
        s = logits - m
        lse = jnp.log(jnp.sum(jnp.exp(s), axis=-1, keepdims=True))
        scores_ref[...] = (s - lse).astype(scores_ref.dtype)


def _decoder_pallas(x2d, w_ih_t, w_hh_t, b_comb, b_hh_n, h0, w_out_t, b_out):
    SB, H = x2d.shape
    L, B, _ = h0.shape
    V = w_out_t.shape[1]
    G = 3 * H

    scores2d, h_fin = pl.pallas_call(
        decoder_kernel,
        out_shape=(jax.ShapeDtypeStruct((SB, V), jnp.float32),
                   jax.ShapeDtypeStruct((L, B, H), jnp.float32)),
        grid_spec=pltpu.PrefetchScalarGridSpec(
            num_scalar_prefetch=0,
            grid=(L,),
            in_specs=[
                pl.BlockSpec((SB, H), lambda l: (0, 0)),       # embedded input
                pl.BlockSpec((1, H, G), lambda l: (l, 0, 0)),  # W_ih^T per layer
                pl.BlockSpec((1, H, G), lambda l: (l, 0, 0)),  # W_hh^T per layer
                pl.BlockSpec((1, 1, G), lambda l: (l, 0, 0)),  # folded bias (r,z,n)
                pl.BlockSpec((1, 1, H), lambda l: (l, 0, 0)),  # b_hh for n gate
                pl.BlockSpec((1, B, H), lambda l: (l, 0, 0)),  # h0 per layer
                pl.BlockSpec((H, V), lambda l: (0, 0)),        # W_out^T
                pl.BlockSpec((1, V), lambda l: (0, 0)),        # b_out
            ],
            out_specs=(
                pl.BlockSpec((SB, V), lambda l: (0, 0)),       # log-softmax scores
                pl.BlockSpec((1, B, H), lambda l: (l, 0, 0)),  # final hidden / layer
            ),
            scratch_shapes=[
                pltpu.VMEM((SB, H), jnp.float32),      # activation slab across layers
                pltpu.VMEM((SB, 3 * H), jnp.float32),  # hoisted input projection
            ],
        ),
        compiler_params=pltpu.CompilerParams(
            dimension_semantics=("arbitrary",)),   # layer recurrence -> sequential
    )(x2d, w_ih_t, w_hh_t, b_comb, b_hh_n, h0, w_out_t, b_out)
    return scores2d, h_fin


# ----------------------------------------------------------------------------
# Wrapper: embedding gather + layout plumbing (outside the kernel), kernel call.
# ----------------------------------------------------------------------------
@jax.jit
def rnn_decoder_forward(params, tokens, hidden):
    emb = params["embedding"]
    B, S = tokens.shape
    H = emb.shape[1]
    L = len(params["gru"])
    V = params["w_out"].shape[0]

    # Embedding lookup (glue gather; padding_idx row of the table is zero).
    x = jnp.take(emb, tokens, axis=0)                       # (B, S, H)
    x2d = jnp.transpose(x, (1, 0, 2)).reshape(S * B, H)     # time-major rows

    # TODO(synk): nn.Dropout on `hidden` and between GRU layers omitted
    # (inference / dropout=0 path); identity here.

    # One-time layout plumbing: pre-transpose weights, fold r/z biases.
    w_ih_t = jnp.stack([p["w_ih"].T for p in params["gru"]], axis=0)   # (L, H, 3H)
    w_hh_t = jnp.stack([p["w_hh"].T for p in params["gru"]], axis=0)   # (L, H, 3H)
    b_comb = jnp.stack(
        [jnp.concatenate([p["b_ih"][:2 * H] + p["b_hh"][:2 * H],
                          p["b_ih"][2 * H:]])[None, :]
         for p in params["gru"]], axis=0)                              # (L, 1, 3H)
    b_hh_n = jnp.stack([p["b_hh"][2 * H:][None, :]
                        for p in params["gru"]], axis=0)               # (L, 1, H)
    w_out_t = params["w_out"].T                                        # (H, V)
    b_out = params["b_out"][None, :]                                   # (1, V)

    scores2d, h_fin = _decoder_pallas(
        x2d, w_ih_t, w_hh_t, b_comb, b_hh_n,
        hidden.astype(jnp.float32), w_out_t, b_out)

    scores = jnp.transpose(scores2d.reshape(S, B, V), (1, 0, 2))       # (B, S, V)
    return {"decoder_output": scores,
            "decoder_hidden": h_fin,
            "attention_weights": None,
            "context_vector": None}


# ----------------------------------------------------------------------------
# Parameter init (deterministic, PyTorch-style).
# ----------------------------------------------------------------------------
def init_params(key, output_size, hidden_size, num_layers):
    bound = 1.0 / math.sqrt(hidden_size)
    keys = jax.random.split(key, 3 + 4 * num_layers)
    emb = jax.random.normal(keys[0], (output_size, hidden_size), jnp.float32)
    emb = emb.at[PAD_IDX].set(0.0)   # padding_idx row is zero
    gru = []
    for l in range(num_layers):
        k = keys[1 + 4 * l: 1 + 4 * (l + 1)]
        gru.append(dict(
            w_ih=jax.random.uniform(k[0], (3 * hidden_size, hidden_size),
                                    jnp.float32, -bound, bound),
            w_hh=jax.random.uniform(k[1], (3 * hidden_size, hidden_size),
                                    jnp.float32, -bound, bound),
            b_ih=jax.random.uniform(k[2], (3 * hidden_size,),
                                    jnp.float32, -bound, bound),
            b_hh=jax.random.uniform(k[3], (3 * hidden_size,),
                                    jnp.float32, -bound, bound),
        ))
    w_out = jax.random.uniform(keys[1 + 4 * num_layers],
                               (output_size, hidden_size),
                               jnp.float32, -bound, bound)
    b_out = jax.random.uniform(keys[2 + 4 * num_layers],
                               (output_size,), jnp.float32, -bound, bound)
    return {"embedding": emb, "gru": gru, "w_out": w_out, "b_out": b_out}


# ----------------------------------------------------------------------------
# Pure-JAX reference (lax.scan) for correctness checking.
# ----------------------------------------------------------------------------
def rnn_decoder_forward_ref(params, tokens, hidden):
    emb = params["embedding"]
    B, S = tokens.shape
    H = emb.shape[1]
    x = jnp.transpose(jnp.take(emb, tokens, axis=0), (1, 0, 2))   # (S, B, H)
    finals = []
    for l, p in enumerate(params["gru"]):
        def step(h, xt, p=p):
            gi = xt @ p["w_ih"].T + p["b_ih"]
            gh = h @ p["w_hh"].T + p["b_hh"]
            r = jax.nn.sigmoid(gi[:, :H] + gh[:, :H])
            z = jax.nn.sigmoid(gi[:, H:2 * H] + gh[:, H:2 * H])
            n = jnp.tanh(gi[:, 2 * H:] + r * gh[:, 2 * H:])
            h_new = (1.0 - z) * n + z * h
            return h_new, h_new
        h_fin, x = lax.scan(step, hidden[l], x)
        finals.append(h_fin)
    logits = jnp.einsum("sbh,vh->sbv", x, params["w_out"]) + params["b_out"]
    scores = jax.nn.log_softmax(logits, axis=-1)
    return {"decoder_output": jnp.transpose(scores, (1, 0, 2)),
            "decoder_hidden": jnp.stack(finals, axis=0),
            "attention_weights": None,
            "context_vector": None}


if __name__ == "__main__":
    VOCAB = 16        # output_size
    HIDDEN = 32       # hidden_size
    NUM_LAYERS = 2
    BATCH = 2

    key = jax.random.PRNGKey(0)
    kp, kt, kh, kt2 = jax.random.split(key, 4)
    params = init_params(kp, VOCAB, HIDDEN, NUM_LAYERS)

    # Decoder spec: (batch, 1) token indices + past hidden state.
    tokens = jax.random.randint(kt, (BATCH, 1), 0, VOCAB, jnp.int32)
    hidden = jax.random.normal(kh, (NUM_LAYERS, BATCH, HIDDEN), jnp.float32)

    out = rnn_decoder_forward(params, tokens, hidden)
    jax.block_until_ready(out["decoder_output"])
    jax.block_until_ready(out["decoder_hidden"])

    ref = rnn_decoder_forward_ref(params, tokens, hidden)
    np.testing.assert_allclose(np.asarray(out["decoder_output"]),
                               np.asarray(ref["decoder_output"]),
                               rtol=1e-5, atol=1e-5)
    np.testing.assert_allclose(np.asarray(out["decoder_hidden"]),
                               np.asarray(ref["decoder_hidden"]),
                               rtol=1e-5, atol=1e-5)
    assert out["decoder_output"].shape == (BATCH, 1, VOCAB)
    assert out["decoder_hidden"].shape == (NUM_LAYERS, BATCH, HIDDEN)
    assert out["attention_weights"] is None
    assert out["context_vector"] is None

    # Multi-step (teacher-forcing style) call exercises the recurrence.
    tokens2 = jax.random.randint(kt2, (BATCH, 6), 0, VOCAB, jnp.int32)
    out2 = rnn_decoder_forward(params, tokens2, hidden)
    jax.block_until_ready(out2["decoder_output"])
    ref2 = rnn_decoder_forward_ref(params, tokens2, hidden)
    np.testing.assert_allclose(np.asarray(out2["decoder_output"]),
                               np.asarray(ref2["decoder_output"]),
                               rtol=1e-5, atol=1e-5)
    np.testing.assert_allclose(np.asarray(out2["decoder_hidden"]),
                               np.asarray(ref2["decoder_hidden"]),
                               rtol=1e-5, atol=1e-5)

    print("KERNEL_OK")
</pallas_src>

<mosaic_0001>
module attributes {stable_mosaic.version = 11 : i64} {
  func.func @decoder_kernel(%arg0: i32, %arg1: memref<2x32xf32, #tpu.memory_space<vmem>>, %arg2: memref<1x32x96xf32, #tpu.memory_space<vmem>>, %arg3: memref<1x32x96xf32, #tpu.memory_space<vmem>>, %arg4: memref<1x1x96xf32, #tpu.memory_space<vmem>>, %arg5: memref<1x1x32xf32, #tpu.memory_space<vmem>>, %arg6: memref<1x2x32xf32, #tpu.memory_space<vmem>>, %arg7: memref<32x16xf32, #tpu.memory_space<vmem>>, %arg8: memref<1x16xf32, #tpu.memory_space<vmem>>, %arg9: memref<2x16xf32, #tpu.memory_space<vmem>>, %arg10: memref<1x2x32xf32, #tpu.memory_space<vmem>>, %arg11: memref<2x32xf32, #tpu.memory_space<vmem>>, %arg12: memref<2x96xf32, #tpu.memory_space<vmem>>) attributes {dimension_semantics = [#tpu.dimension_semantics<arbitrary>], iteration_bounds = array<i64: 2>, scalar_prefetch = 0 : i64, scratch_operands = 2 : i64, tpu.core_type = #tpu.core_type<tc>, window_params = [{pipeline_mode = #tpu.pipeline_mode<synchronous>, transform_indices = @transform_0, window_bounds = array<i64: 2, 32>}, {transform_indices = @transform_1, window_bounds = array<i64: 1, 32, 96>}, {transform_indices = @transform_2, window_bounds = array<i64: 1, 32, 96>}, {transform_indices = @transform_3, window_bounds = array<i64: 1, 1, 96>}, {transform_indices = @transform_4, window_bounds = array<i64: 1, 1, 32>}, {transform_indices = @transform_5, window_bounds = array<i64: 1, 2, 32>}, {pipeline_mode = #tpu.pipeline_mode<synchronous>, transform_indices = @transform_6, window_bounds = array<i64: 32, 16>}, {pipeline_mode = #tpu.pipeline_mode<synchronous>, transform_indices = @transform_7, window_bounds = array<i64: 1, 16>}, {pipeline_mode = #tpu.pipeline_mode<synchronous>, transform_indices = @transform_8, window_bounds = array<i64: 2, 16>}, {transform_indices = @transform_9, window_bounds = array<i64: 1, 2, 32>}]} {
    %c0_i32 = arith.constant 0 : i32
    %0 = arith.cmpi eq, %arg0, %c0_i32 : i32
    %1 = arith.extui %0 : i1 to i32
    %c0_i32_0 = arith.constant 0 : i32
    %2 = arith.cmpi ne, %1, %c0_i32_0 : i32
    scf.if %2 {
      %c0_31 = arith.constant 0 : index
      %c0_32 = arith.constant 0 : index
      %56 = vector.load %arg1[%c0_31, %c0_32] : memref<2x32xf32, #tpu.memory_space<vmem>>, vector<2x32xf32>
      %c0_33 = arith.constant 0 : index
      %c0_34 = arith.constant 0 : index
      %57 = vector.load %arg11[%c0_33, %c0_34] : memref<2x32xf32, #tpu.memory_space<vmem>>, vector<2x32xf32>
      tpu.vector_store %arg11[%c0_33, %c0_34], %56 {strides = array<i32>} : memref<2x32xf32, #tpu.memory_space<vmem>>, vector<2x32xf32>,
    } else {
    }
    %c0 = arith.constant 0 : index
    %c0_1 = arith.constant 0 : index
    %c0_2 = arith.constant 0 : index
    %3 = vector.load %arg2[%c0, %c0_1, %c0_2] : memref<1x32x96xf32, #tpu.memory_space<vmem>>, vector<1x32x96xf32>
    %4 = vector.shape_cast %3 : vector<1x32x96xf32> to vector<32x96xf32>
    %c0_3 = arith.constant 0 : index
    %c0_4 = arith.constant 0 : index
    %c0_5 = arith.constant 0 : index
    %5 = vector.load %arg3[%c0_3, %c0_4, %c0_5] : memref<1x32x96xf32, #tpu.memory_space<vmem>>, vector<1x32x96xf32>
    %6 = vector.shape_cast %5 : vector<1x32x96xf32> to vector<32x96xf32>
    %c0_6 = arith.constant 0 : index
    %c0_7 = arith.constant 0 : index
    %c0_8 = arith.constant 0 : index
    %7 = vector.load %arg5[%c0_6, %c0_7, %c0_8] : memref<1x1x32xf32, #tpu.memory_space<vmem>>, vector<1x1x32xf32>
    %8 = vector.shape_cast %7 : vector<1x1x32xf32> to vector<1x32xf32>
    %9 = vector.shape_cast %8 : vector<1x32xf32> to vector<1x32xf32>
    %10 = vector.broadcast %9 : vector<1x32xf32> to vector<2x32xf32>
    %c0_9 = arith.constant 0 : index
    %c0_10 = arith.constant 0 : index
    %11 = vector.load %arg11[%c0_9, %c0_10] : memref<2x32xf32, #tpu.memory_space<vmem>>, vector<2x32xf32>
    %cst = arith.constant dense<0.000000e+00> : vector<2x96xf32>
    %12 = tpu.matmul %11, %4, %cst {dimension_numbers = #tpu.dot_dimension_numbers<[1], [0], [0], [1], [0, 0, 1, 1], [], []>} : vector<2x32xf32>, vector<32x96xf32>, vector<2x96xf32> -> vector<2x96xf32>
    %c0_11 = arith.constant 0 : index
    %c0_12 = arith.constant 0 : index
    %c0_13 = arith.constant 0 : index
    %13 = vector.load %arg4[%c0_11, %c0_12, %c0_13] : memref<1x1x96xf32, #tpu.memory_space<vmem>>, vector<1x1x96xf32>
    %14 = vector.shape_cast %13 : vector<1x1x96xf32> to vector<1x96xf32>
    %15 = vector.broadcast %14 : vector<1x96xf32> to vector<2x96xf32>
    %16 = arith.addf %12, %15 : vector<2x96xf32>
    %c0_14 = arith.constant 0 : index
    %c0_15 = arith.constant 0 : index
    %17 = vector.load %arg12[%c0_14, %c0_15] : memref<2x96xf32, #tpu.memory_space<vmem>>, vector<2x96xf32>
    tpu.vector_store %arg12[%c0_14, %c0_15], %16 {strides = array<i32>} : memref<2x96xf32, #tpu.memory_space<vmem>>, vector<2x96xf32>,
    %c0_16 = arith.constant 0 : index
    %c0_17 = arith.constant 0 : index
    %c0_18 = arith.constant 0 : index
    %18 = vector.load %arg6[%c0_16, %c0_17, %c0_18] : memref<1x2x32xf32, #tpu.memory_space<vmem>>, vector<1x2x32xf32>
    %19 = vector.shape_cast %18 : vector<1x2x32xf32> to vector<2x32xf32>
    %cst_19 = arith.constant dense<0.000000e+00> : vector<2x96xf32>
    %20 = tpu.matmul %19, %6, %cst_19 {dimension_numbers = #tpu.dot_dimension_numbers<[1], [0], [0], [1], [0, 0, 1, 1], [], []>} : vector<2x32xf32>, vector<32x96xf32>, vector<2x96xf32> -> vector<2x96xf32>
    %c0_20 = arith.constant 0 : index
    %c0_21 = arith.constant 0 : index
    %21 = vector.load %arg12[%c0_20, %c0_21] : memref<2x96xf32, #tpu.memory_space<vmem>>, vector<2x96xf32>
    %22 = vector.extract_strided_slice %21 {offsets = [0, 0], sizes = [2, 32], strides = [1, 1]} : vector<2x96xf32> to vector<2x32xf32>
    %23 = vector.extract_strided_slice %20 {offsets = [0, 0], sizes = [2, 32], strides = [1, 1]} : vector<2x96xf32> to vector<2x32xf32>
    %24 = arith.addf %22, %23 : vector<2x32xf32>
    %25 = arith.negf %24 : vector<2x32xf32>
    %26 = math.exp %25 : vector<2x32xf32>
    %cst_22 = arith.constant 1.000000e+00 : f32
    %27 = vector.broadcast %cst_22 : f32 to vector<2x32xf32>
    %28 = arith.addf %27, %26 : vector<2x32xf32>
    %29 = arith.divf %27, %28 : vector<2x32xf32>
    %30 = vector.extract_strided_slice %21 {offsets = [0, 32], sizes = [2, 32], strides = [1, 1]} : vector<2x96xf32> to vector<2x32xf32>
    %31 = vector.extract_strided_slice %20 {offsets = [0, 32], sizes = [2, 32], strides = [1, 1]} : vector<2x96xf32> to vector<2x32xf32>
    %32 = arith.addf %30, %31 : vector<2x32xf32>
    %33 = arith.negf %32 : vector<2x32xf32>
    %34 = math.exp %33 : vector<2x32xf32>
    %cst_23 = arith.constant 1.000000e+00 : f32
    %35 = vector.broadcast %cst_23 : f32 to vector<2x32xf32>
    %36 = arith.addf %35, %34 : vector<2x32xf32>
    %37 = arith.divf %35, %36 : vector<2x32xf32>
    %38 = vector.extract_strided_slice %21 {offsets = [0, 64], sizes = [2, 32], strides = [1, 1]} : vector<2x96xf32> to vector<2x32xf32>
    %39 = vector.extract_strided_slice %20 {offsets = [0, 64], sizes = [2, 32], strides = [1, 1]} : vector<2x96xf32> to vector<2x32xf32>
    %40 = arith.addf %39, %10 : vector<2x32xf32>
    %41 = arith.mulf %29, %40 : vector<2x32xf32>
    %42 = arith.addf %38, %41 : vector<2x32xf32>
    %43 = math.tanh %42 : vector<2x32xf32>
    %cst_24 = arith.constant 1.000000e+00 : f32
    %44 = vector.broadcast %cst_24 : f32 to vector<2x32xf32>
    %45 = arith.subf %44, %37 : vector<2x32xf32>
    %46 = arith.mulf %45, %43 : vector<2x32xf32>
    %47 = arith.mulf %37, %19 : vector<2x32xf32>
    %48 = arith.addf %46, %47 : vector<2x32xf32>
    %c0_25 = arith.constant 0 : index
    %c0_26 = arith.constant 0 : index
    %49 = vector.load %arg11[%c0_25, %c0_26] : memref<2x32xf32, #tpu.memory_space<vmem>>, vector<2x32xf32>
    tpu.vector_store %arg11[%c0_25, %c0_26], %48 {strides = array<i32>} : memref<2x32xf32, #tpu.memory_space<vmem>>, vector<2x32xf32>,
    %c0_27 = arith.constant 0 : index
    %c0_28 = arith.constant 0 : index
    %c0_29 = arith.constant 0 : index
    %50 = vector.load %arg10[%c0_27, %c0_28, %c0_29] : memref<1x2x32xf32, #tpu.memory_space<vmem>>, vector<1x2x32xf32>
    %51 = vector.shape_cast %50 : vector<1x2x32xf32> to vector<2x32xf32>
    %52 = vector.shape_cast %48 : vector<2x32xf32> to vector<1x2x32xf32>
    tpu.vector_store %arg10[%c0_27, %c0_28, %c0_29], %52 {strides = array<i32>} : memref<1x2x32xf32, #tpu.memory_space<vmem>>, vector<1x2x32xf32>,
    %c1_i32 = arith.constant 1 : i32
    %53 = arith.cmpi eq, %arg0, %c1_i32 : i32
    %54 = arith.extui %53 : i1 to i32
    %c0_i32_30 = arith.constant 0 : i32
    %55 = arith.cmpi ne, %54, %c0_i32_30 : i32
    scf.if %55 {
      %c0_31 = arith.constant 0 : index
      %c0_32 = arith.constant 0 : index
      %56 = vector.load %arg11[%c0_31, %c0_32] : memref<2x32xf32, #tpu.memory_space<vmem>>, vector<2x32xf32>
      %c0_33 = arith.constant 0 : index
      %c0_34 = arith.constant 0 : index
      %57 = vector.load %arg7[%c0_33, %c0_34] : memref<32x16xf32, #tpu.memory_space<vmem>>, vector<32x16xf32>
      %cst_35 = arith.constant dense<0.000000e+00> : vector<2x16xf32>
      %58 = tpu.matmul %56, %57, %cst_35 {dimension_numbers = #tpu.dot_dimension_numbers<[1], [0], [0], [1], [0, 0, 1, 1], [], []>} : vector<2x32xf32>, vector<32x16xf32>, vector<2x16xf32> -> vector<2x16xf32>
      %c0_36 = arith.constant 0 : index
      %c0_37 = arith.constant 0 : index
      %59 = vector.load %arg8[%c0_36, %c0_37] : memref<1x16xf32, #tpu.memory_space<vmem>>, vector<1x16xf32>
      %60 = vector.broadcast %59 : vector<1x16xf32> to vector<2x16xf32>
      %61 = arith.addf %58, %60 : vector<2x16xf32>
      %cst_38 = arith.constant dense<0xFF800000> : vector<2xf32>
      %62 = vector.multi_reduction <maximumf>, %61, %cst_38 [1] : vector<2x16xf32> to vector<2xf32>
      %63 = vector.shape_cast %62 : vector<2xf32> to vector<2x1xf32>
      %64 = vector.broadcast %63 : vector<2x1xf32> to vector<2x16xf32>
      %65 = arith.subf %61, %64 : vector<2x16xf32>
      %66 = math.exp %65 : vector<2x16xf32>
      %cst_39 = arith.constant dense<0.000000e+00> : vector<2xf32>
      %67 = vector.multi_reduction <add>, %66, %cst_39 [1] : vector<2x16xf32> to vector<2xf32>
      %68 = vector.shape_cast %67 : vector<2xf32> to vector<2x1xf32>
      %69 = math.log %68 : vector<2x1xf32>
      %70 = vector.broadcast %69 : vector<2x1xf32> to vector<2x16xf32>
      %71 = arith.subf %65, %70 : vector<2x16xf32>
      %c0_40 = arith.constant 0 : index
      %c0_41 = arith.constant 0 : index
      %72 = vector.load %arg9[%c0_40, %c0_41] : memref<2x16xf32, #tpu.memory_space<vmem>>, vector<2x16xf32>
      tpu.vector_store %arg9[%c0_40, %c0_41], %71 {strides = array<i32>} : memref<2x16xf32, #tpu.memory_space<vmem>>, vector<2x16xf32>,
    } else {
    }
    return
  }
  func.func @transform_0(%arg0: i32) -> (i32, i32) {
    %c0_i32 = arith.constant 0 : i32
    %c0_i32_0 = arith.constant 0 : i32
    %c0_i32_1 = arith.constant 0 : i32
    return %c0_i32, %c0_i32_0 : i32, i32
  }
  func.func @transform_1(%arg0: i32) -> (i32, i32, i32) {
    %c0_i32 = arith.constant 0 : i32
    %c0_i32_0 = arith.constant 0 : i32
    %c0_i32_1 = arith.constant 0 : i32
    return %arg0, %c0_i32, %c0_i32_0 : i32, i32, i32
  }
  func.func @transform_2(%arg0: i32) -> (i32, i32, i32) {
    %c0_i32 = arith.constant 0 : i32
    %c0_i32_0 = arith.constant 0 : i32
    %c0_i32_1 = arith.constant 0 : i32
    return %arg0, %c0_i32, %c0_i32_0 : i32, i32, i32
  }
  func.func @transform_3(%arg0: i32) -> (i32, i32, i32) {
    %c0_i32 = arith.constant 0 : i32
    %c0_i32_0 = arith.constant 0 : i32
    %c0_i32_1 = arith.constant 0 : i32
    return %arg0, %c0_i32, %c0_i32_0 : i32, i32, i32
  }
  func.func @transform_4(%arg0: i32) -> (i32, i32, i32) {
    %c0_i32 = arith.constant 0 : i32
    %c0_i32_0 = arith.constant 0 : i32
    %c0_i32_1 = arith.constant 0 : i32
    return %arg0, %c0_i32, %c0_i32_0 : i32, i32, i32
  }
  func.func @transform_5(%arg0: i32) -> (i32, i32, i32) {
    %c0_i32 = arith.constant 0 : i32
    %c0_i32_0 = arith.constant 0 : i32
    %c0_i32_1 = arith.constant 0 : i32
    return %arg0, %c0_i32, %c0_i32_0 : i32, i32, i32
  }
  func.func @transform_6(%arg0: i32) -> (i32, i32) {
    %c0_i32 = arith.constant 0 : i32
    %c0_i32_0 = arith.constant 0 : i32
    %c0_i32_1 = arith.constant 0 : i32
    return %c0_i32, %c0_i32_0 : i32, i32
  }
  func.func @transform_7(%arg0: i32) -> (i32, i32) {
    %c0_i32 = arith.constant 0 : i32
    %c0_i32_0 = arith.constant 0 : i32
    %c0_i32_1 = arith.constant 0 : i32
    return %c0_i32, %c0_i32_0 : i32, i32
  }
  func.func @transform_8(%arg0: i32) -> (i32, i32) {
    %c0_i32 = arith.constant 0 : i32
    %c0_i32_0 = arith.constant 0 : i32
    %c0_i32_1 = arith.constant 0 : i32
    return %c0_i32, %c0_i32_0 : i32, i32
  }
  func.func @transform_9(%arg0: i32) -> (i32, i32, i32) {
    %c0_i32 = arith.constant 0 : i32
    %c0_i32_0 = arith.constant 0 : i32
    %c0_i32_1 = arith.constant 0 : i32
    return %arg0, %c0_i32, %c0_i32_0 : i32, i32, i32
  }
}

</mosaic_0001>

<bundles_post_ra>
// kernel: rnn_decoder_forward.1
= control target key start
LH: loop header
LB: loop body
LE: loop exit
PB: predicated region body
PF: predicated region fallthrough
CT: control target
= control target key end

     0   :  { %15 = vsyncpa [#allocation5], 0  ;;  %s1354_s0 = inlined_call_operand.vmem [shape: f32[2,32], index: 0, kind: input, shape index: {}]   ;;  %s1355_s1 = inlined_call_operand.vmem [shape: f32[2,32,96], index: 1, kind: input, shape index: {}]   ;;  %s1356_s2 = inlined_call_operand.vmem [shape: f32[2,32,96], index: 2, kind: input, shape index: {}]   ;;  %s1357_s3 = inlined_call_operand.vmem [shape: f32[2,1,96], index: 3, kind: input, shape index: {}]   ;;  %s1358_s4 = inlined_call_operand.vmem [shape: f32[2,1,32], index: 4, kind: input, shape index: {}]   ;;  %s1359_s5 = inlined_call_operand.vmem [shape: f32[2,2,32], index: 5, kind: input, shape index: {}]   ;;  %s1360_s6 = inlined_call_operand.vmem [shape: f32[32,16], index: 6, kind: input, shape index: {}]   ;;  %s1361_s7 = inlined_call_operand.vmem [shape: f32[1,16], index: 7, kind: input, shape index: {}]   ;;  %s1362_s8 = inlined_call_operand.hbm [shape: f32[2,16], index: 8, kind: output, shape index: {0}]   ;;  %s1363_s9 = inlined_call_operand.hbm [shape: f32[2,2,32], index: 9, kind: output, shape index: {1}]  }
   0x1   :  { %16 = vsyncpa [#allocation7], 0 }
   0x2   :  { %18 = vsyncpa [#allocation7 + $0x1], 0  ;;  %s1170_s30 = smov 0   ;;  %s1172_s10 = smov 0  }
   0x3   :  { %s1174_s11 = smov 0   ;;  %s1176_s12 = smov 0  }
   0x4 LB: > { %1373 = sst [smem:[#allocation10_spill]] %s1095_s30  ;;  %s1191_s13 = sadd.s32 4294967295, %s1107_s12   ;;  %s1107_s12 = sphi %s1176_s12, %s1387_s12   ;;  %s1103_s11 = sphi %s1174_s11, %s1389_s11   ;;  %s1099_s10 = sphi %s1172_s10, %s1391_s10   ;;  %s1095_s30 = sphi %s1170_s30, %s1390_s30  }
   0x5   : > { %1374 = sst [smem:[#allocation11_spill]] %s1103_s11  ;;  %s857_s14 = sadd.s32 4294967294, %s1107_s12  }
   0x6   : > { %1375 = sst [smem:[#allocation12_spill]] %s1107_s12  ;;  %s1195_s15 = sadd.s32 1, %s1107_s12  }
   0x7   : > { %1376 = sst [smem:[#allocation13_spill]] %s1195_s15  ;;  %s245_s16 = sadd.s32 1, %s1103_s11 }
   0x8   : > { %s242_s17 = ssub.s32 %s1107_s12, %s1195_s15  ;;  %p255_p0 = scmp.ne.s32.totalorder %s1103_s11, %s1099_s10 }
   0x9   : > { %p243_p1 = scmp.eq.s32.totalorder %s242_s17, 0  ;;  %p256_p2 = scmp.eq.s32.totalorder %s1191_s13, 1 }
   0xa   : > { %p261_p3 = scmp.ne.s32.totalorder %s1099_s10, %s1095_s30  ;;  %p262_p4 = scmp.eq.s32.totalorder %s857_s14, 1 }
   0xb   : > { %s1206_s18 = scalar_select %p243_p1, %s1103_s11, %s245_s16  }
   0xc   : > { %p1210_p5 = por %p256_p2, %p255_p0  ;;  %p1214_p6 = por %p262_p4, %p261_p3 }
   0xd   : > { %1377 = sst [smem:[#allocation14_spill]] %s1206_s18  ;;  %p860_p7 = scmp.ge.s32.totalorder %s1107_s12, 1 }
   0xe   : > { %s1378_s19 = scalar_select %p1210_p5, 1, 0 }
   0xf   : > { %s1380_s20 = scalar_select %p1214_p6, 1, 0 }
  0x10   : > { %1379 = sst [smem:[#allocation15_spill]] %s1378_s19  ;;  %p324_p8 = scmp.lt.s32.totalorder %s1107_s12, 3 }
  0x11   : > { %1381 = sst [smem:[#allocation16_spill]] %s1380_s20 }
  0x12   : > { %p325_p9 = pnand %p860_p7, %p324_p8 }
  0x13   : > { %s1364_s21 = sand.u32 (!%p325_p9), 1, %s1099_s10   ;;  %p375_p10 = scmp.lt.s32.totalorder (!%p325_p9), %s1191_s13, 1 }
  0x14   : > { %328 = sbr.rel (%p325_p9) target bundleno = 1327 (0x52f), region = 52  ;;  %s1224_s22 = sshll.u32 (!%p325_p9), %s1364_s21, 1 }
  0x15   : > { %s374_s25 = scalar_lea.vmem (!%p325_p9), [#allocation6], %s1224_s22  ;;  %p867_p11 = scmp.ne.s32.totalorder (!%p325_p9), %s1191_s13, 0 }
  0x1b   : > { %s1227_s23 = scalar_select %p375_p10, %s1191_s13, 1 }
  0x1c   : > { %398 = sbr.rel (%p867_p11) target bundleno = 35 (0x23), region = 56  ;;  %v399_v0 = vld [vmem:[%s1354_s0] sm:$0x3] (!%p867_p11)  ;;  %vm400_vm0 = vcmask (!%p867_p11), 254976  }
  0x1d   : > { %s882_s24 = sshll.u32 %s1227_s23, 5  ;;  %s387_s27 = scalar_lea.vmem %s1357_s3, %s1227_s23  ;;  %401 = vst.msk [vmem:[#allocation2] sm:$0x3] (!%p867_p11), %vm400_vm0, %v399_v0 }
  0x1e   : > { %s379_s14 = scalar_lea.vmem %s1355_s1, %s882_s24  ;;  %s384_s21 = scalar_lea.vmem %s1356_s2, %s882_s24 }
  0x1f   : > { %s390_s15 = scalar_lea.vmem %s1358_s4, %s1227_s23  ;;  %s866_s20 = sshll.u32 %s1227_s23, 1 }
  0x20   : > { %s1248_s19 = scalar_lea.vmem %s1359_s5, %s866_s20 }
  0x23 PF: > { %v402_v1 = vld [vmem:[%s379_s14] sm:$0xff]  ;;  %v403_v2 = vld [vmem:[%s379_s14 + $0x8] sm:$0xff]  ;;  %v1109_v4 = vmov 0.0|0.0   ;;  %v404_v7 = vld [vmem:[%s379_s14 + $0x10] sm:$0xff]  ;;  %vm1110_vm1 = vmmov 0   ;;  %v1111_v12 = vmov 0.0  }
  0x24   : > { %v406_v3 = vld [vmem:[%s384_s21] sm:$0xff]  ;;  %932 = vmatprep.subr.bf16.mxu0 %v1109_v4  ;;  %938 = vmatprep.subr.bf16.mxu1 %v1109_v4  ;;  %v933_v5 = vpack.c.bf16 %v403_v2, %v402_v1  ;;  %v407_v6 = vld [vmem:[%s384_s21 + $0x8] sm:$0xff]  ;;  %v405_v8 = vld [vmem:[%s379_s14 + $0x18] sm:$0xff]  ;;  %s1112_s30 = smov 64   ;;  %vm424_vm2 = vcmask 261120   ;;  %vm498_vm3 = vcmask 779264  }
  0x25   : > { %v939_v9 = vpack.c.bf16 %v407_v6, %v406_v3  ;;  %v408_v10 = vld [vmem:[%s384_s21 + $0x10] sm:$0xff]  ;;  %v409_v11 = vld [vmem:[%s384_s21 + $0x18] sm:$0xff]  ;;  %907 = vmatprep.mubr.msk.f32.mxu0 %vm1110_vm1, %v1111_v12  ;;  %918 = vmatprep.mubr.msk.f32.mxu1 %vm1110_vm1, %v1111_v12  ;;  %v936_v13 = vpack.c.bf16 %v405_v8, %v404_v7  ;;  %v868_v14 = vld [vmem:[%s390_s15] ss:$0 sm:$0xff]  ;;  %s1113_s15 = smov 32   ;;  %s1114_s18 = smov 96  }
  0x26   : > { %934 = vmatpush3.bf16.msra.mxu0 %v933_v5  ;;  %v942_v15 = vpack.c.bf16 %v409_v11, %v408_v10  ;;  %582 = vrot.lane.b32.xlu0 %v868_v14, %s1112_s30  ;;  %v416_v16 = vld [vmem:[#allocation2] sm:$0x3]  ;;  %vm612_vm4 = vcmask 254976   ;;  %p873_p12 = scmp.ne.s32.totalorder %s1191_s13, 1 }
  0x27   : > { %940 = vmatpush3.bf16.msra.mxu1 %v939_v9  ;;  %935 = vmatprep.subr.bf16.mxu0 %v1109_v4  ;;  %v500_v17 = vld [vmem:[%s1248_s19] sm:$0x3]  ;;  %v621_v45 = vld [vmem:[%s1360_s6 + $0x8] sm:$0xff] (!%p873_p12)  ;;  %v622_v46 = vld [vmem:[%s1360_s6 + $0x10] sm:$0xff] (!%p873_p12)  ;;  %v1115_v47 = vmov (!%p873_p12), 0.0|0.0   ;;  %vm1116_vm5 = vmmov (!%p873_p12), 0  }
  0x28   : > { %941 = vmatprep.subr.bf16.mxu1 %v1109_v4  ;;  %v869_v18 = vld [vmem:[%s387_s27] ss:$0 sm:$0xff]  ;;  %v623_v49 = vld [vmem:[%s1360_s6 + $0x18] sm:$0xff] (!%p873_p12)  ;;  %v1117_v50 = vmov (!%p873_p12), 0.0   ;;  %vm704_vm6 = vcmask (!%p873_p12), 123904  }
  0x29   : > { %v620_v44 = vld [vmem:[%s1360_s6] sm:$0xff] (!%p873_p12)  ;;  %v948_v51 = vpack.c.bf16 (!%p873_p12), %v623_v49, %v622_v46 }
  0x2a   : > { %937 = vmatpush3.bf16.msra.mxu0 %v936_v13  ;;  %v945_v48 = vpack.c.bf16 (!%p873_p12), %v621_v45, %v620_v44  ;;  %v874_v53 = vld [vmem:[%s1361_s7] ss:$0 sm:$0xff] (!%p873_p12) }
  0x2b   : > { %943 = vmatpush3.bf16.msra.mxu1 %v942_v15  ;;  %944 = vmatprep.subr.bf16.mxu0 (!%p873_p12), %v1115_v47 }
  0x2d   : > { %908 = vmatmul.mubr.msk.f32.vlgmr.msra.gmra.mrb[0].mxu0 %vm424_vm2, %v416_v16 }
  0x2e   : > { %919 = vmatmul.mubr.msk.f32.vlgmr.msra.gmra.mrb[0].mxu1 %vm424_vm2, %v500_v17  ;;  %929 = vmatprep.mubr.msk.f32.mxu0 (!%p873_p12), %vm1116_vm5, %v1117_v50 }
  0x2f   : > { %946 = vmatpush3.bf16.msra.mxu0 (!%p873_p12), %v945_v48 }
  0x30   : > { %947 = vmatprep.subr.bf16.mxu0 (!%p873_p12), %v1115_v47 }
  0x33   : > { %949 = vmatpush3.bf16.msra.mxu0 (!%p873_p12), %v948_v51 }
  0x98   : > { %v583_v19 = vpop.permute.xlu0 %582 }
 0x100   : > { %v494_v20 = vpop.f32.mrb[0].mxu0 }
 0x101   : > { %v495_v21 = vadd.f32 %v869_v18, %v494_v20  ;;  %v570_v22 = vpop.f32.mrb[0].mxu1  ;;  %v909_v23 = vpop.f32.mrb[1].mxu0 }
 0x102   : > { %v585_v24 = vadd.f32 %v583_v19, %v570_v22  ;;  %v920_v25 = vpop.f32.mrb[1].mxu1 }
 0x103   : > { %499 = vst.msk [vmem:[#allocation3] sm:$0x3] %vm498_vm3, %v495_v21 }
 0x104   : > { %587 = vrot.lane.b32.xlu0 %v585_v24, %s1112_s30 }
 0x108   : > { %603 = vrot.lane.b32.xlu0 %v500_v17, %s1113_s15 }
 0x10a   : > { %v574_v26 = vld [vmem:[#allocation3] sm:$0x3] }
 0x10b   : > { %v575_v27 = vadd.f32 %v574_v26, %v570_v22 }
 0x10d   : > { %v872_v28 = vmul.f32 -1.442695, %v575_v27 }
 0x10f   : > { %1005 = vpow2.f32 %v872_v28 }
 0x119   : > { %v1006_v29 = vpop.eup %1005 }
 0x11a   : > { %v579_v30 = vadd.f32 1.0, %v1006_v29 }
 0x11c   : > { %1007 = vrcp.f32 %v579_v30 }
 0x126   : > { %v1008_v31 = vpop.eup %1007 }
 0x127   : > { %v597_v38 = vsub.f32 1.0, %v1008_v31 }
 0x176   : > { %v588_v32 = vpop.permute.xlu0 %587 }
 0x177   : > { %v590_v33 = vmul.f32 %v1008_v31, %v588_v32 }
 0x179   : > { %592 = vrot.lane.b32.xlu1 %v590_v33, %s1112_s30 }
 0x17a   : > { %v604_v37 = vpop.permute.xlu0 %603 }
 0x17b   : > { %v606_v40 = vmul.f32 %v1008_v31, %v604_v37 }
 0x1eb   : > { %v593_v34 = vpop.permute.xlu1 %592 }
 0x1ec   : > { %v595_v35 = vadd.f32 %v593_v34, %v574_v26 }
 0x1ee   : > { %1009 = vtanh.f32 %v595_v35 }
 0x1f8   : > { %v1010_v36 = vpop.eup %1009 }
 0x1f9   : > { %599 = vrot.lane.b32.xlu1 %v1010_v36, %s1114_s18 }
 0x26b   : > { %v600_v39 = vpop.permute.xlu1 %599 }
 0x26c   : > { %v602_v41 = vmul.f32 %v600_v39, %v597_v38 }
 0x26e   : > { %v607_v42 = vadd.f32 %v606_v40, %v602_v41 }
 0x270   : > { %609 = vrot.lane.b32.xlu1 %v607_v42, %s1114_s18 }
 0x2dd   : > { %618 = sbr.rel (%p873_p12) target bundleno = 1278 (0x4fe), region = 60 }
 0x2e2   : > { %v610_v43 = vpop.permute.xlu1 %609 }
 0x2e3   : > { %613 = vst.msk [vmem:[#allocation2] sm:$0x3] %vm612_vm4, %v610_v43  ;;  %614 = vst.msk [vmem:[%s374_s25] sm:$0x3] %vm612_vm4, %v610_v43 }
 0x2ea   : > { %v619_v52 = vld [vmem:[#allocation2] sm:$0x3] }
 0x2eb   : > { %930 = vmatmul.mubr.msk.f32.vlgmr.msra.gmra.mrb[0].mxu0 %vm424_vm2, %v619_v52 }
 0x3be   : > { %v700_v54 = vpop.f32.mrb[0].mxu0 }
 0x3bf   : > { %v701_v55 = vadd.f32 %v874_v53, %v700_v54  ;;  %v931_v56 = vpop.f32.mrb[1].mxu0 }
 0x3c1   : > { %v705_v57 = vsel %vm704_vm6, %v701_v55, -inf }
 0x3c2   : > { %706 = vmax.xlane.f32.xlu0 %v705_v57 }
 0x44f   : > { %v707_v58 = vpop.xlane.xlu0 %706 }
 0x450   : > { %v708_v59 = vsub.f32 %v701_v55, %v707_v58 }
 0x452   : > { %v709_v60 = vmul.f32 1.442695, %v708_v59 }
 0x454   : > { %1011 = vpow2.f32 %v709_v60 }
 0x45e   : > { %v1012_v61 = vpop.eup %1011 }
 0x45f   : > { %v711_v62 = vsel %vm704_vm6, %v1012_v61, 0.0 }
 0x460   : > { %712 = vadd.xlane.f32.xlu0 %v711_v62 }
 0x4ed   : > { %v713_v63 = vpop.xlane.xlu0 %712 }
 0x4ee   : > { %1013 = vlog2.f32 %v713_v63 }
 0x4f8   : > { %v1014_v0 = vpop.eup %1013 }
 0x4f9   : > { %v715_v1 = vmul.f32 0.6931472, %v1014_v0 }
 0x4fb   : > { %v716_v2 = vsub.f32 %v708_v59, %v715_v1 }
 0x4fd   : > { %717 = vst.msk [vmem:[#allocation4] sm:$0x3] %vm704_vm6, %v716_v2 }
 0x4fe PF: > { %s1118_s26 = smov [#allocation4]   ;;  %s878_s30 = sshll.u32 %s1191_s13, 5 }
 0x4ff   : > { %s730_s28 = sshll.u32 %s1118_s26, 4  ;;  %s1292_s15 = scalar_lea.hbm %s1363_s9, %s878_s30  ;;  %s731_s28 = int_to_ptr.vmem [resolvable:$true] %s730_s28 }
 0x500   : > { %s1015_s18 = scalar_lea.vmem %s731_s28, 32  ;;  %p1022_p3 = scmp.lt.s32.totalorder %s731_s28, %s731_s28 }
 0x501   : > { %p1016_p13 = scmp.ne.s32.totalorder %s731_s28, %s1015_s18  ;;  %p1023_p4 = scmp.lt.s32.totalorder %s1015_s18, %s1015_s18 }
 0x503   : > { %p1017_p0 = pnand %p1016_p13, %p256_p2  ;;  %p1024_p7 = por %p1023_p4, %p1022_p3 }
 0x505   : > { %p1018_p1 = pneg %p1017_p0 }
 0x507   : > { %p1025_p8 = pnand %p1024_p7, %p1018_p1 }
 0x509   : > { %1028 = shalt.err (!%p1025_p8)
}
 0x50a   : > { %s1029_s21 = scalar_lea.hbm %s1362_s8, 32 }
 0x50b   : > { %p1030_p9 = scmp.ne.s32.totalorder %s1362_s8, %s1029_s21  ;;  %p1035_p12 = scmp.lt.u32.totalorder %s1029_s21, %s1362_s8 }
 0x50d   : > { %p1031_p10 = pnand %p1030_p9, %p256_p2 }
 0x50f   : > { %p1032_p11 = pneg %p1031_p10 }
 0x511   : > { %p1037_p13 = pnand %p1035_p12, %p1032_p11 }
 0x513   : > { %1040 = shalt.err (!%p1037_p13)
}
 0x514   : > { %951 = dma.vmem_to_hbm [thread:$0]  (%p256_p2), %s731_s28, 32, %s1362_s8, [#allocation5]  }
 0x515   : > { %s743_s26 = sshll.u32 %s374_s25, 4  ;;  %s1383_s30 = sand.u32 1, %s1099_s10   ;;  %s744_s26 = int_to_ptr.vmem [resolvable:$true] %s743_s26 }
 0x516   : > { %s719_s11 = scalar_lea.sflag [#allocation7], %s1383_s30  ;;  %s1041_s12 = scalar_lea.vmem %s744_s26, 32 }
 0x517   : > { %p1042_p0 = scmp.ne.s32.totalorder %s744_s26, %s1041_s12  ;;  %s1119_s18 = smov [#allocation6]  }
 0x518   : > { %s1045_s19 = sshll.u32 %s1119_s18, 4  ;;  %s1046_s19 = int_to_ptr.vmem [resolvable:$false] %s1045_s19 }
 0x519   : > { %p1043_p1 = pnand %p1042_p0, %p1210_p5  ;;  %s1047_s20 = scalar_lea.vmem %s1046_s19, 64 }
 0x51a   : > { %p1048_p4 = scmp.lt.s32.totalorder %s744_s26, %s1046_s19  ;;  %p1049_p7 = scmp.lt.s32.totalorder %s1047_s20, %s1041_s12 }
 0x51b   : > { %p1044_p3 = pneg %p1043_p1 }
 0x51c   : > { %p1050_p8 = por %p1049_p7, %p1048_p4 }
 0x51e   : > { %p1051_p9 = pnand %p1050_p8, %p1044_p3 }
 0x520   : > { %1054 = shalt.err (!%p1051_p9)
}
 0x521   : > { %s1055_s22 = scalar_lea.hbm %s1292_s15, 32  ;;  %s1059_s21 = scalar_lea.hbm %s1363_s9, 64 }
 0x522   : > { %p1056_p10 = scmp.ne.s32.totalorder %s1292_s15, %s1055_s22  ;;  %p1060_p13 = scmp.lt.u32.totalorder %s1292_s15, %s1363_s9 }
 0x523   : > { %p1061_p0 = scmp.lt.u32.totalorder %s1059_s21, %s1055_s22  ;;  %p1063_p3 = scmp.lt.u32.totalorder %s1055_s22, %s1292_s15 }
 0x524   : > { %p1057_p11 = pnand %p1056_p10, %p1210_p5 }
 0x525   : > { %p1062_p1 = por %p1061_p0, %p1060_p13 }
 0x526   : > { %p1058_p12 = pneg %p1057_p11 }
 0x527   : > { %p1064_p4 = por %p1063_p3, %p1062_p1 }
 0x529   : > { %p1065_p7 = pnand %p1064_p4, %p1058_p12 }
 0x52b   : > { %1068 = shalt.err (!%p1065_p7)
}
 0x52c   : > { %952 = dma.vmem_to_hbm [thread:$0]  (%p1210_p5), %s744_s26, 32, %s1292_s15, %s719_s11  }
 0x52d   : > { %1086 = dma.done.wait (%p256_p2), [#allocation5], 32  }
 0x52e   : > { %1088 = vsyncadd (%p256_p2), [#allocation5], 4294967264 }
 0x52f PF: > { %s1384_s27 = sld [smem:[#allocation12_spill]]  ;;  %s1385_s29 = sld [smem:[#allocation10_spill]] }
 0x535   : > { %p962_p8 = scmp.ge.s32.totalorder %s1384_s27, 2  ;;  %s759_s16 = sand.u32 1, %s1385_s29  }
 0x536   : > { %s760_s30 = scalar_lea.sflag [#allocation7], %s759_s16 }
 0x537   : > { %p957_p9 = pnand %p962_p8, %p1214_p6 }
 0x539   : > { %1090 = dma.done.wait (!%p957_p9), %s760_s30, 32  }
 0x53a   : > { %1092 = vsyncadd (!%p957_p9), %s760_s30, 4294967264  ;;  %s1387_s12 = sld [smem:[#allocation13_spill]]  ;;  %s1388_s17 = sld [smem:[#allocation11_spill]] }
 0x53b   : > { %s1389_s11 = sld [smem:[#allocation14_spill]]  ;;  %s1390_s30 = smov %s1099_s10 }
 0x540   : > { %p21_p5 = scmp.ge.s32.totalorder %s1387_s12, 4   ;;  %s1391_s10 = smov %s1388_s17 }
 0x542   :  { %23 = sbr.rel (!%p21_p5) target bundleno = 4 (0x4), region = 116 }
 0x549   :  { %765 = vsyncpa [#allocation5], 1 }
 0x54a   :  { %767 = vsyncpa [#allocation5 + $0x1], 1 }
 0x54b   :  { %768 = vsyncpa [#allocation7], 1 }
 0x54c   :  { %770 = vsyncpa [#allocation7 + $0x1], 1 }

</bundles_post_ra>
